<compile_context>
chip_gen: v5e
topology: v5e:2x2
jax: 0.10.0
libtpu: 0.0.40
codegen_flags: <defaults>
</compile_context>

<pallas_src>
import jax
import jax.numpy as jnp
from jax.experimental import pallas as pl
from jax.experimental.pallas import tpu as pltpu


def dnn_kernel(x_ref, w1_ref, b1_ref, w2_ref, b2_ref, w3_ref, b3_ref, o_ref):
    # x streamed as f32 (TB, D); cast to bf16 in-kernel (avoids a separate XLA cast pass).
    x = x_ref[...].astype(jnp.bfloat16)

    # Layer 1: (d1, D) . (TB, D)^T -> (d1, TB); batch on lanes from here on.
    h1 = jax.lax.dot_general(
        w1_ref[...], x,
        dimension_numbers=(((1,), (1,)), ((), ())),
        preferred_element_type=jnp.float32)                       # (d1, TB) f32
    h1 = jnp.maximum(h1 + b1_ref[...], 0.0).astype(jnp.bfloat16)  # lane-dense bias/ReLU/cast

    # Layer 2: (d2, d1) @ (d1, TB) -> (d2, TB)
    h2 = jax.lax.dot_general(
        w2_ref[...], h1,
        dimension_numbers=(((1,), (0,)), ((), ())),
        preferred_element_type=jnp.float32)                       # (d2, TB) f32
    h2 = jnp.maximum(h2 + b2_ref[...], 0.0).astype(jnp.bfloat16)

    # Layer 3: (1, d2) @ (d2, TB) -> (1, TB); lane-dense output row.
    out = jax.lax.dot_general(
        w3_ref[...], h2,
        dimension_numbers=(((1,), (0,)), ((), ())),
        preferred_element_type=jnp.float32)                       # (1, TB) f32
    out = out + b3_ref[0]                                         # SMEM scalar bias
    o_ref[0] = out.astype(o_ref.dtype)                            # block (1, 1, TB)


def _tile_vmem_bytes(tb, D, d1, d2):
    """Approximate per-grid-step VMEM footprint for a (tb, D) batch tile."""
    x_stream = 2 * tb * D * 4                     # double-buffered f32 x tile
    x_cast = tb * D * 2                           # in-kernel bf16 copy of x
    inter = tb * (d1 + d2) * (4 + 2)              # h1/h2 in f32 + bf16
    out = 2 * tb * 4                              # double-buffered f32 output slab
    weights = 2 * 2 * (d1 * D + d2 * d1 + d2)     # resident bf16 weights (x2 buffers)
    biases = 2 * 4 * 128 * (d1 + d2)              # lane-padded f32 biases
    return x_stream + x_cast + inter + out + weights + biases


def _max_tb(D, d1, d2, budget=40 * 1024 * 1024, ceiling=65536):
    """Largest power-of-two batch tile whose footprint fits the VMEM budget."""
    tb = 8
    while tb * 2 <= ceiling and _tile_vmem_bytes(tb * 2, D, d1, d2) <= budget:
        tb *= 2
    return tb


def _pick_tb(batch, D, d1, d2):
    """Largest power-of-two tile dividing batch; prefer >= 2 tiles (v7x dual TensorCore)."""
    top = _max_tb(D, d1, d2)
    candidates = []
    t = top
    while t >= 8:
        candidates.append(t)
        t //= 2
    for tb in candidates:                         # best: big tile AND >= 2 grid steps
        if batch % tb == 0 and batch // tb >= 2:
            return tb
    for tb in candidates:                         # else: any dividing power-of-two tile
        if batch % tb == 0:
            return tb
    # Fallback: single full-array tile. Guard against silently blowing VMEM (esp. v7x 64 MiB).
    if _tile_vmem_bytes(batch, D, d1, d2) > 48 * 1024 * 1024:
        raise ValueError(
            f"batch={batch} has no power-of-two tile divisor and is too large for a single "
            f"VMEM-resident tile; pad the batch to a multiple of 8.")
    return batch


def dnn_forward(x, params, tb=None):
    """x: [B, D] f32. params (PyTorch-native [out, in] weights):
       w1 [d1, D], b1 [d1, 1], w2 [d2, d1], b2 [d2, 1], w3 [1, d2], b3 [1]."""
    B, D = x.shape
    d1 = params["w1"].shape[0]
    d2 = params["w2"].shape[0]
    tb = tb if tb is not None else _pick_tb(B, D, d1, d2)
    assert B % tb == 0, f"batch {B} must be divisible by tile {tb}"
    num_tiles = B // tb

    # Weights: tiny + resident -> cast to bf16 in the wrapper. x stays f32 (cast in-kernel).
    w1 = params["w1"].astype(jnp.bfloat16)
    w2 = params["w2"].astype(jnp.bfloat16)
    w3 = params["w3"].astype(jnp.bfloat16)
    b1 = params["b1"].astype(jnp.float32)
    b2 = params["b2"].astype(jnp.float32)
    b3 = params["b3"].astype(jnp.float32).reshape(1)   # SMEM scalar

    grid_spec = pltpu.PrefetchScalarGridSpec(
        num_scalar_prefetch=0,
        grid=(num_tiles,),
        in_specs=[
            pl.BlockSpec((tb, D), lambda i: (i, 0)),        # x: streamed batch tiles (f32)
            pl.BlockSpec((d1, D), lambda i: (0, 0)),        # w1: resident
            pl.BlockSpec((d1, 1), lambda i: (0, 0)),        # b1
            pl.BlockSpec((d2, d1), lambda i: (0, 0)),       # w2
            pl.BlockSpec((d2, 1), lambda i: (0, 0)),        # b2
            pl.BlockSpec((1, d2), lambda i: (0, 0)),        # w3
            pl.BlockSpec(memory_space=pltpu.MemorySpace.SMEM),  # b3: scalar in SMEM
        ],
        out_specs=pl.BlockSpec((1, 1, tb), lambda i: (i, 0, 0)),  # lane-dense output slab
    )

    vmem_limit = int(min(max(2 * _tile_vmem_bytes(tb, D, d1, d2), 16 * 1024 * 1024),
                         56 * 1024 * 1024))

    cost = pl.CostEstimate(
        flops=2 * B * (D * d1 + d1 * d2 + d2),
        transcendentals=0,
        bytes_accessed=B * D * 4 + B * 4 + 2 * (d1 * D + d2 * d1 + d2) + 4 * (d1 + d2 + 1),
    )

    out = pl.pallas_call(
        dnn_kernel,
        out_shape=jax.ShapeDtypeStruct((num_tiles, 1, tb), jnp.float32),
        grid_spec=grid_spec,
        compiler_params=pltpu.CompilerParams(
            dimension_semantics=("parallel",),              # batch tiles across TCs (v7x)
            vmem_limit_bytes=vmem_limit,
        ),
        cost_estimate=cost,
    )(x.astype(jnp.float32), w1, b1, w2, b2, w3, b3)

    return out.reshape(B, 1)


def init_params(key, input_dims):
    """Deterministic init matching nn.Linear shapes (PyTorch-native [out, in] weights)."""
    d1, d2 = input_dims // 2, input_dims // 4
    ks = jax.random.split(key, 6)

    def uni(k, shape, fan_in):
        bound = 1.0 / jnp.sqrt(fan_in)
        return jax.random.uniform(k, shape, jnp.float32, -bound, bound)

    return {
        "w1": uni(ks[0], (d1, input_dims), input_dims),  # [out, in]
        "b1": uni(ks[1], (d1, 1), input_dims),
        "w2": uni(ks[2], (d2, d1), d1),                  # [out, in]
        "b2": uni(ks[3], (d2, 1), d1),
        "w3": uni(ks[4], (1, d2), d2),                   # [out=1, in=d2]
        "b3": uni(ks[5], (1,), d2),
    }


def dnn_reference(x, p):
    """Pure-JAX reference mirroring the kernel's bf16-input / f32-accumulate math."""
    bf = lambda a: a.astype(jnp.bfloat16).astype(jnp.float32)
    h1 = jnp.maximum(bf(x) @ bf(p["w1"]).T + p["b1"].T, 0.0)
    h2 = jnp.maximum(bf(h1) @ bf(p["w2"]).T + p["b2"].T, 0.0)
    return bf(h2) @ bf(p["w3"]).T + p["b3"]


if __name__ == "__main__":
    key = jax.random.PRNGKey(0)
    k_x, k_p = jax.random.split(key)
    B, D = 512, 32  # batch=512, input_dims=32 (hidden: 16 -> 8 -> 1)
    x = jax.random.normal(k_x, (B, D), jnp.float32)
    params = init_params(k_p, D)

    out = dnn_forward(x, params)   # auto tile: 2 x 256-row tiles -> exercises grid/pipeline
    jax.block_until_ready(out)

    ref = dnn_reference(x, params)
    assert out.shape == (B, 1)
    assert jnp.allclose(out, ref, atol=1e-3, rtol=1e-3), float(jnp.max(jnp.abs(out - ref)))
    print("KERNEL_OK")
</pallas_src>

<mosaic_0001>
module attributes {stable_mosaic.version = 11 : i64} {
  func.func @dnn_kernel(%arg0: i32, %arg1: memref<256x32xf32, #tpu.memory_space<vmem>>, %arg2: memref<16x32xbf16, #tpu.memory_space<vmem>>, %arg3: memref<16x1xf32, #tpu.memory_space<vmem>>, %arg4: memref<8x16xbf16, #tpu.memory_space<vmem>>, %arg5: memref<8x1xf32, #tpu.memory_space<vmem>>, %arg6: memref<1x8xbf16, #tpu.memory_space<vmem>>, %arg7: memref<1xf32, #tpu.memory_space<smem>>, %arg8: memref<1x1x256xf32, #tpu.memory_space<vmem>>) attributes {dimension_semantics = [#tpu.dimension_semantics<parallel>], iteration_bounds = array<i64: 2>, scalar_prefetch = 0 : i64, scratch_operands = 0 : i64, tpu.core_type = #tpu.core_type<tc>, window_params = [{transform_indices = @transform_0, window_bounds = array<i64: 256, 32>}, {pipeline_mode = #tpu.pipeline_mode<synchronous>, transform_indices = @transform_1, window_bounds = array<i64: 16, 32>}, {pipeline_mode = #tpu.pipeline_mode<synchronous>, transform_indices = @transform_2, window_bounds = array<i64: 16, 1>}, {pipeline_mode = #tpu.pipeline_mode<synchronous>, transform_indices = @transform_3, window_bounds = array<i64: 8, 16>}, {pipeline_mode = #tpu.pipeline_mode<synchronous>, transform_indices = @transform_4, window_bounds = array<i64: 8, 1>}, {pipeline_mode = #tpu.pipeline_mode<synchronous>, transform_indices = @transform_5, window_bounds = array<i64: 1, 8>}, {transform_indices = @transform_6, window_bounds = array<i64: 1>}, {transform_indices = @transform_7, window_bounds = array<i64: 1, 1, 256>}]} {
    %c0 = arith.constant 0 : index
    %c0_0 = arith.constant 0 : index
    %0 = vector.load %arg1[%c0, %c0_0] : memref<256x32xf32, #tpu.memory_space<vmem>>, vector<256x32xf32>
    %1 = arith.truncf %0 : vector<256x32xf32> to vector<256x32xbf16>
    %c0_1 = arith.constant 0 : index
    %c0_2 = arith.constant 0 : index
    %2 = vector.load %arg2[%c0_1, %c0_2] : memref<16x32xbf16, #tpu.memory_space<vmem>>, vector<16x32xbf16>
    %cst = arith.constant dense<0.000000e+00> : vector<16x256xf32>
    %3 = tpu.matmul %2, %1, %cst {dimension_numbers = #tpu.dot_dimension_numbers<[1], [1], [0], [0], [0, 0, 1, 0], [], []>} : vector<16x32xbf16>, vector<256x32xbf16>, vector<16x256xf32> -> vector<16x256xf32>
    %c0_3 = arith.constant 0 : index
    %c0_4 = arith.constant 0 : index
    %4 = vector.load %arg3[%c0_3, %c0_4] : memref<16x1xf32, #tpu.memory_space<vmem>>, vector<16x1xf32>
    %5 = vector.broadcast %4 : vector<16x1xf32> to vector<16x256xf32>
    %6 = arith.addf %3, %5 : vector<16x256xf32>
    %cst_5 = arith.constant 0.000000e+00 : f32
    %7 = vector.broadcast %cst_5 : f32 to vector<16x256xf32>
    %8 = arith.maximumf %6, %7 : vector<16x256xf32>
    %9 = arith.truncf %8 : vector<16x256xf32> to vector<16x256xbf16>
    %c0_6 = arith.constant 0 : index
    %c0_7 = arith.constant 0 : index
    %10 = vector.load %arg4[%c0_6, %c0_7] : memref<8x16xbf16, #tpu.memory_space<vmem>>, vector<8x16xbf16>
    %cst_8 = arith.constant dense<0.000000e+00> : vector<8x256xf32>
    %11 = tpu.matmul %10, %9, %cst_8 {dimension_numbers = #tpu.dot_dimension_numbers<[1], [0], [0], [1], [0, 0, 1, 1], [], []>} : vector<8x16xbf16>, vector<16x256xbf16>, vector<8x256xf32> -> vector<8x256xf32>
    %c0_9 = arith.constant 0 : index
    %c0_10 = arith.constant 0 : index
    %12 = vector.load %arg5[%c0_9, %c0_10] : memref<8x1xf32, #tpu.memory_space<vmem>>, vector<8x1xf32>
    %13 = vector.broadcast %12 : vector<8x1xf32> to vector<8x256xf32>
    %14 = arith.addf %11, %13 : vector<8x256xf32>
    %cst_11 = arith.constant 0.000000e+00 : f32
    %15 = vector.broadcast %cst_11 : f32 to vector<8x256xf32>
    %16 = arith.maximumf %14, %15 : vector<8x256xf32>
    %17 = arith.truncf %16 : vector<8x256xf32> to vector<8x256xbf16>
    %c0_12 = arith.constant 0 : index
    %c0_13 = arith.constant 0 : index
    %18 = vector.load %arg6[%c0_12, %c0_13] : memref<1x8xbf16, #tpu.memory_space<vmem>>, vector<1x8xbf16>
    %cst_14 = arith.constant dense<0.000000e+00> : vector<1x256xf32>
    %19 = tpu.matmul %18, %17, %cst_14 {dimension_numbers = #tpu.dot_dimension_numbers<[1], [0], [0], [1], [0, 0, 1, 1], [], []>} : vector<1x8xbf16>, vector<8x256xbf16>, vector<1x256xf32> -> vector<1x256xf32>
    %c0_15 = arith.constant 0 : index
    %20 = memref.load %arg7[%c0_15] : memref<1xf32, #tpu.memory_space<smem>>
    %21 = vector.broadcast %20 : f32 to vector<1x256xf32>
    %22 = arith.addf %19, %21 : vector<1x256xf32>
    %c0_16 = arith.constant 0 : index
    %c0_17 = arith.constant 0 : index
    %c0_18 = arith.constant 0 : index
    %23 = vector.load %arg8[%c0_16, %c0_17, %c0_18] : memref<1x1x256xf32, #tpu.memory_space<vmem>>, vector<1x1x256xf32>
    %24 = vector.shape_cast %23 : vector<1x1x256xf32> to vector<1x256xf32>
    %25 = vector.shape_cast %22 : vector<1x256xf32> to vector<1x1x256xf32>
    tpu.vector_store %arg8[%c0_16, %c0_17, %c0_18], %25 {strides = array<i32>} : memref<1x1x256xf32, #tpu.memory_space<vmem>>, vector<1x1x256xf32>,
    return
  }
  func.func @transform_0(%arg0: i32) -> (i32, i32) {
    %c0_i32 = arith.constant 0 : i32
    %c0_i32_0 = arith.constant 0 : i32
    return %arg0, %c0_i32 : i32, i32
  }
  func.func @transform_1(%arg0: i32) -> (i32, i32) {
    %c0_i32 = arith.constant 0 : i32
    %c0_i32_0 = arith.constant 0 : i32
    %c0_i32_1 = arith.constant 0 : i32
    return %c0_i32, %c0_i32_0 : i32, i32
  }
  func.func @transform_2(%arg0: i32) -> (i32, i32) {
    %c0_i32 = arith.constant 0 : i32
    %c0_i32_0 = arith.constant 0 : i32
    %c0_i32_1 = arith.constant 0 : i32
    return %c0_i32, %c0_i32_0 : i32, i32
  }
  func.func @transform_3(%arg0: i32) -> (i32, i32) {
    %c0_i32 = arith.constant 0 : i32
    %c0_i32_0 = arith.constant 0 : i32
    %c0_i32_1 = arith.constant 0 : i32
    return %c0_i32, %c0_i32_0 : i32, i32
  }
  func.func @transform_4(%arg0: i32) -> (i32, i32) {
    %c0_i32 = arith.constant 0 : i32
    %c0_i32_0 = arith.constant 0 : i32
    %c0_i32_1 = arith.constant 0 : i32
    return %c0_i32, %c0_i32_0 : i32, i32
  }
  func.func @transform_5(%arg0: i32) -> (i32, i32) {
    %c0_i32 = arith.constant 0 : i32
    %c0_i32_0 = arith.constant 0 : i32
    %c0_i32_1 = arith.constant 0 : i32
    return %c0_i32, %c0_i32_0 : i32, i32
  }
  func.func @transform_6(%arg0: i32) -> i32 {
    %c0_i32 = arith.constant 0 : i32
    %c0_i32_0 = arith.constant 0 : i32
    return %c0_i32 : i32
  }
  func.func @transform_7(%arg0: i32) -> (i32, i32, i32) {
    %c0_i32 = arith.constant 0 : i32
    %c0_i32_0 = arith.constant 0 : i32
    %c0_i32_1 = arith.constant 0 : i32
    return %arg0, %c0_i32, %c0_i32_0 : i32, i32, i32
  }
}

</mosaic_0001>

<bundles_post_ra>
// kernel: tpu_custom_call.1
= control target key start
LH: loop header
LB: loop body
LE: loop exit
PB: predicated region body
PF: predicated region fallthrough
CT: control target
= control target key end

     0   :  { %s927_s0 = inlined_call_operand.vmem [shape: f32[512,32], index: 0, kind: input, shape index: {}]   ;;  %s928_s1 = inlined_call_operand.vmem [shape: bf16[16,32], index: 1, kind: input, shape index: {}]   ;;  %s929_s2 = inlined_call_operand.vmem [shape: f32[16,1], index: 2, kind: input, shape index: {}]   ;;  %s930_s3 = inlined_call_operand.vmem [shape: bf16[8,16], index: 3, kind: input, shape index: {}]   ;;  %s931_s4 = inlined_call_operand.vmem [shape: f32[8,1], index: 4, kind: input, shape index: {}]   ;;  %s932_s5 = inlined_call_operand.vmem [shape: bf16[1,8], index: 5, kind: input, shape index: {}]   ;;  %s933_s6 = inlined_call_operand.<no memory space> [shape: f32[1], index: 6, kind: input, shape index: {}]   ;;  %s934_s7 = inlined_call_operand.hbm [shape: f32[2,1,256], index: 7, kind: output, shape index: {}]  }
   0x1   :  { %12 = sst [smem:[#allocation2]] %s933_s6 }
   0x2   :  { %13 = vsyncpa [#allocation4], 0 }
   0x3   :  { %15 = vsyncpa [#allocation4 + $0x1], 0  ;;  %s773_s26 = smov 0   ;;  %s775_s27 = smov 0  }
   0x4   :  { %s777_s28 = smov 0   ;;  %s779_s29 = smov 0  }
   0x5 LB: > { %s794_s6 = sadd.s32 4294967295, %s727_s29   ;;  %s601_s30 = sadd.s32 4294967294, %s727_s29   ;;  %s727_s29 = sphi %s779_s29, %s940_s29   ;;  %s723_s28 = sphi %s777_s28, %s939_s28   ;;  %s719_s27 = sphi %s775_s27, %s938_s27   ;;  %s715_s26 = sphi %s773_s26, %s937_s26  }
   0x6   : > { %s798_s8 = sadd.s32 1, %s727_s29   ;;  %s180_s9 = sadd.s32 1, %s723_s28 }
   0x7   : > { %s177_s10 = ssub.s32 %s727_s29, %s798_s8  ;;  %p190_p0 = scmp.ne.s32.totalorder %s723_s28, %s719_s27 }
   0x8   : > { %p178_p1 = scmp.eq.s32.totalorder %s177_s10, 0  ;;  %p191_p2 = scmp.eq.s32.totalorder %s794_s6, 1 }
   0x9   : > { %p196_p3 = scmp.ne.s32.totalorder %s719_s27, %s715_s26  ;;  %p197_p4 = scmp.eq.s32.totalorder %s601_s30, 1 }
   0xa   : > { %s809_s11 = scalar_select %p178_p1, %s723_s28, %s180_s9  }
   0xb   : > { %p811_p5 = por %p191_p2, %p190_p0  ;;  %p815_p6 = por %p197_p4, %p196_p3 }
   0xc   : > { %p604_p7 = scmp.ge.s32.totalorder %s727_s29, 1  ;;  %p242_p8 = scmp.lt.s32.totalorder %s727_s29, 3 }
   0xe   : > { %p243_p9 = pnand %p604_p7, %p242_p8 }
   0xf   : > { %s606_s14 = sshll.u32 (!%p243_p9), %s794_s6, 5  ;;  %s476_s16 = sld [smem:[#allocation2]] (!%p243_p9) }
  0x10   : > { %246 = sbr.rel (%p243_p9) target bundleno = 518 (0x206), region = 48  ;;  %p275_p10 = scmp.lt.s32.totalorder (!%p243_p9), %s606_s14, 63 }
  0x11   : > { %s271_s17 = sand.u32 (!%p243_p9), 1, %s719_s27   ;;  %s619_s19 = sshll.u32 (!%p243_p9), %s794_s6, 1 }
  0x12   : > { %s537_s22 = scalar_lea.hbm (!%p243_p9), %s934_s7, %s619_s19  ;;  %s527_s6 = scalar_lea.sflag (!%p243_p9), [#allocation4], %s271_s17 }
  0x13   : > { %s541_s25 = sshll.u32 (!%p243_p9), %s537_s22, 4  ;;  %s542_s25 = int_to_ptr.hbm [resolvable:$true] %s541_s25 }
  0x14   : > { %s679_s30 = sshra.s32 (!%p243_p9), %s542_s25, 4  ;;  %s680_s30 = int_to_ptr.hbm [resolvable:$true] %s679_s30 }
  0x15   : > { %s942_s14 = smov (!%p275_p10, %s606_s14), 63  ;;  %vm348_vm0 = vcmask 261120   ;;  %v331_v44 = vld [vmem:[%s929_s2] sm:$0xff]  ;;  %v729_v46 = vmov 0   ;;  %v332_v54 = vld [vmem:[%s929_s2 + $0x8] sm:$0xff]  ;;  %vm441_vm1 = vcmask 130048   ;;  %p686_p0 = scmp.lt.s32.totalorder %s680_s30, %s934_s7 }
  0x16   : > { %s607_s15 = sshll.u32 %s942_s14, 3  ;;  %663 = vset.pattern.permute.xlu0 %v729_v46  ;;  %664 = vset.pattern.permute.xlu1 %v729_v46  ;;  %vm482_vm2 = vcmask 1043456   ;;  %vm478_vm3 = vcmask 64512   ;;  %vm518_vm4 = vcmask 1040384   ;;  %s681_s9 = scalar_lea.hbm %s680_s30, 2 }
  0x17   : > { %s825_s18 = scalar_lea.vmem %s927_s0, %s607_s15  ;;  %335 = vperm.xlu0 %663, %v331_v44   ;;  %p682_p11 = scmp.ne.s32.totalorder %s680_s30, %s681_s9 }
  0x18   : > { %v295_v0 = vld [vmem:[%s825_s18 + $0x70] sm:$0xff]  ;;  %v296_v1 = vld [vmem:[%s825_s18 + $0x78] sm:$0xff]  ;;  %v293_v6 = vld [vmem:[%s825_s18 + $0x60] sm:$0xff]  ;;  %s685_s15 = scalar_lea.hbm %s934_s7, 4 }
  0x19   : > { %v311_v2 = vld [vmem:[%s825_s18 + $0xf0] sm:$0xff]  ;;  %v320_v3 = vpack.c.bf16 %v296_v1, %v295_v0  ;;  %v312_v4 = vld [vmem:[%s825_s18 + $0xf8] sm:$0xff]  ;;  %v294_v7 = vld [vmem:[%s825_s18 + $0x68] sm:$0xff]  ;;  %p683_p12 = pnand %p682_p11, %p811_p5  ;;  %p687_p1 = scmp.lt.s32.totalorder %s685_s15, %s681_s9 }
  0x1a   : > { %v328_v5 = vpack.c.bf16 %v312_v4, %v311_v2  ;;  %v309_v9 = vld [vmem:[%s825_s18 + $0xe0] sm:$0xff]  ;;  %v310_v10 = vld [vmem:[%s825_s18 + $0xe8] sm:$0xff]  ;;  %v319_v12 = vpack.c.bf16 %v294_v7, %v293_v6  ;;  %v291_v16 = vld [vmem:[%s825_s18 + $0x50] sm:$0xff] }
  0x1b   : > { %v374_v8 = vsel %vm348_vm0, %v320_v3, 0  ;;  %v327_v13 = vpack.c.bf16 %v310_v10, %v309_v9  ;;  %v292_v17 = vld [vmem:[%s825_s18 + $0x58] sm:$0xff]  ;;  %v307_v18 = vld [vmem:[%s825_s18 + $0xd0] sm:$0xff]  ;;  %v289_v24 = vld [vmem:[%s825_s18 + $0x40] sm:$0xff]  ;;  %p684_p13 = pneg %p683_p12  ;;  %p688_p2 = por %p687_p1, %p686_p0 }
  0x1c   : > { %400 = vmatpush.bf16.xpose.msra.mxu0 %v374_v8  ;;  %v398_v11 = vsel %vm348_vm0, %v328_v5, 0  ;;  %v371_v14 = vsel %vm348_vm0, %v319_v12, 0  ;;  %v308_v19 = vld [vmem:[%s825_s18 + $0xd8] sm:$0xff]  ;;  %v318_v20 = vpack.c.bf16 %v292_v17, %v291_v16  ;;  %v290_v25 = vld [vmem:[%s825_s18 + $0x48] sm:$0xff]  ;;  %v305_v26 = vld [vmem:[%s825_s18 + $0xc0] sm:$0xff] }
  0x1d   : > { %414 = vmatpush.bf16.xpose.msra.mxu1 %v398_v11  ;;  %v395_v15 = vsel %vm348_vm0, %v327_v13, 0  ;;  %v326_v21 = vpack.c.bf16 %v308_v19, %v307_v18  ;;  %v306_v27 = vld [vmem:[%s825_s18 + $0xc8] sm:$0xff]  ;;  %v317_v28 = vpack.c.bf16 %v290_v25, %v289_v24  ;;  %v287_v32 = vld [vmem:[%s825_s18 + $0x30] sm:$0xff]  ;;  %v288_v33 = vld [vmem:[%s825_s18 + $0x38] sm:$0xff]  ;;  %p689_p3 = pnand %p688_p2, %p684_p13 }
  0x1e   : > { %v368_v22 = vsel %vm348_vm0, %v318_v20, 0  ;;  %v325_v29 = vpack.c.bf16 %v306_v27, %v305_v26  ;;  %v303_v34 = vld [vmem:[%s825_s18 + $0xb0] sm:$0xff]  ;;  %v304_v35 = vld [vmem:[%s825_s18 + $0xb8] sm:$0xff]  ;;  %v316_v36 = vpack.c.bf16 %v288_v33, %v287_v32  ;;  %v285_v40 = vld [vmem:[%s825_s18 + $0x20] sm:$0xff] }
  0x1f   : > { %v392_v23 = vsel %vm348_vm0, %v326_v21, 0  ;;  %v365_v30 = vsel %vm348_vm0, %v317_v28, 0  ;;  %v324_v37 = vpack.c.bf16 %v304_v35, %v303_v34  ;;  %v286_v41 = vld [vmem:[%s825_s18 + $0x28] sm:$0xff]  ;;  %v301_v42 = vld [vmem:[%s825_s18 + $0xa0] sm:$0xff]  ;;  %v283_v50 = vld [vmem:[%s825_s18 + $0x10] sm:$0xff]  ;;  %340 = vperm.xlu0 %663, %v332_v54  }
  0x20   : > { %v389_v31 = vsel %vm348_vm0, %v325_v29, 0  ;;  %v362_v38 = vsel %vm348_vm0, %v316_v36, 0  ;;  %v302_v43 = vld [vmem:[%s825_s18 + $0xa8] sm:$0xff]  ;;  %v315_v45 = vpack.c.bf16 %v286_v41, %v285_v40  ;;  %v284_v51 = vld [vmem:[%s825_s18 + $0x18] sm:$0xff]  ;;  %v299_v52 = vld [vmem:[%s825_s18 + $0x90] sm:$0xff]  ;;  %v477_v36 = vstv %s476_s16 }
  0x21   : > { %v386_v39 = vsel %vm348_vm0, %v324_v37, 0  ;;  %v323_v47 = vpack.c.bf16 %v302_v43, %v301_v42  ;;  %v300_v53 = vld [vmem:[%s825_s18 + $0x98] sm:$0xff]  ;;  %v314_v55 = vpack.c.bf16 %v284_v51, %v283_v50  ;;  %v281_v59 = vld [vmem:[%s825_s18] sm:$0xff]  ;;  %v282_v60 = vld [vmem:[%s825_s18 + $0x8] sm:$0xff] }
  0x22   : > { %v359_v48 = vsel %vm348_vm0, %v315_v45, 0  ;;  %v322_v56 = vpack.c.bf16 %v300_v53, %v299_v52  ;;  %v297_v61 = vld [vmem:[%s825_s18 + $0x80] sm:$0xff]  ;;  %v298_v62 = vld [vmem:[%s825_s18 + $0x88] sm:$0xff]  ;;  %v313_v63 = vpack.c.bf16 %v282_v60, %v281_v59  ;;  %s605_s18 = sshll.u32 %s271_s17, 1 }
  0x23   : > { %v383_v49 = vsel %vm348_vm0, %v323_v47, 0  ;;  %v356_v57 = vsel %vm348_vm0, %v314_v55, 0  ;;  %v321_v0 = vpack.c.bf16 %v298_v62, %v297_v61  ;;  %v622_v3 = vld [vmem:[%s928_s1] sm:$0xff]  ;;  %s273_s23 = scalar_lea.vmem [#allocation3], %s605_s18 }
  0x24   : > { %401 = vmatpush.bf16.xpose.msra.mxu0 %v371_v14  ;;  %v380_v58 = vsel %vm348_vm0, %v322_v56, 0  ;;  %v353_v1 = vsel %vm348_vm0, %v313_v63, 0  ;;  %v435_v4 = vld [vmem:[%s931_s4] sm:$0xff]  ;;  %s539_s24 = sshll.u32 %s273_s23, 4  ;;  %s540_s24 = int_to_ptr.vmem [resolvable:$true] %s539_s24 }
  0x25   : > { %415 = vmatpush.bf16.xpose.msra.mxu1 %v395_v15  ;;  %v377_v2 = vsel %vm348_vm0, %v321_v0, 0  ;;  %438 = vperm.xlu1 %664, %v435_v4   ;;  %v434_v21 = vld [vmem:[%s930_s3] sm:$0xf] }
  0x26   : > { %v475_v34 = vld [vmem:[%s932_s5] sm:$0x1] }
  0x2c   : > { %402 = vmatpush.bf16.xpose.msra.mxu0 %v368_v22 }
  0x2d   : > { %416 = vmatpush.bf16.xpose.msra.mxu1 %v392_v23 }
  0x34   : > { %403 = vmatpush.bf16.xpose.msra.mxu0 %v365_v30 }
  0x35   : > { %417 = vmatpush.bf16.xpose.msra.mxu1 %v389_v31 }
  0x3c   : > { %404 = vmatpush.bf16.xpose.msra.mxu0 %v362_v38  ;;  %v521_v38 = vlaneseq }
  0x3d   : > { %418 = vmatpush.bf16.xpose.msra.mxu1 %v386_v39 }
  0x3e   : > { %vm523_vm5 = vcmp.lt.s32.totalorder %v521_v38, 256 }
  0x44   : > { %405 = vmatpush.bf16.xpose.msra.mxu0 %v359_v48 }
  0x45   : > { %419 = vmatpush.bf16.xpose.msra.mxu1 %v383_v49 }
  0x4c   : > { %406 = vmatpush.bf16.xpose.msra.mxu0 %v356_v57 }
  0x4d   : > { %420 = vmatpush.bf16.xpose.msra.mxu1 %v380_v58 }
  0x54   : > { %407 = vmatpush.bf16.xpose.msra.mxu0 %v353_v1 }
  0x55   : > { %421 = vmatpush.bf16.xpose.msra.mxu1 %v377_v2 }
  0x5b   : > { %612 = vmatmul.msk.bf16.vlgmr.msra.gmra.mxu0 %vm348_vm0, %v622_v3 }
  0x5c   : > { %613 = vmatmul.msk.bf16.vlgmr.msra.gmra.mxu1 %vm348_vm0, %v622_v3 }
  0x89   : > { %v336_v5 = vpop.permute.xlu0 %335 }
  0x91   : > { %v341_v9 = vpop.permute.xlu0 %340 }
  0x97   : > { %v439_v22 = vpop.permute.xlu1 %438 }
  0xd8   : > { %v409_v6 = vpop.f32.mrf.mxu0 }
  0xd9   : > { %v423_v7 = vpop.f32.mrf.mxu1  ;;  %v410_v8 = vadd.f32 %v409_v6, %v336_v5 }
  0xda   : > { %v424_v10 = vadd.f32 %v423_v7, %v336_v5 }
  0xdb   : > { %v428_v15 = vmax.f32 %v410_v8, 0.0 }
  0xdc   : > { %v429_v17 = vmax.f32 %v424_v10, 0.0 }
  0xe0   : > { %v411_v11 = vpop.f32.mrf.mxu0 }
  0xe1   : > { %v412_v12 = vadd.f32 %v411_v11, %v341_v9  ;;  %v425_v13 = vpop.f32.mrf.mxu1 }
  0xe2   : > { %v426_v14 = vadd.f32 %v425_v13, %v341_v9 }
  0xe3   : > { %v430_v16 = vmax.f32 %v412_v12, 0.0 }
  0xe4   : > { %v431_v18 = vmax.f32 %v426_v14, 0.0 }
  0xe5   : > { %v432_v19 = vpack.c.bf16 %v430_v16, %v428_v15 }
  0xe6   : > { %v433_v20 = vpack.c.bf16 %v431_v18, %v429_v17 }
  0xe7   : > { %452 = vmatpush.bf16.msra.mxu2 %v432_v19 }
  0xe8   : > { %465 = vmatpush.bf16.msra.mxu3 %v433_v20 }
  0xea   : > { %614 = vmatmul.msk.bf16.vlgmr.msra.gmra.mxu2 %vm441_vm1, %v434_v21 }
  0xeb   : > { %615 = vmatmul.msk.bf16.vlgmr.msra.gmra.mxu3 %vm441_vm1, %v434_v21 }
 0x16d   : > { %v454_v23 = vpop.f32.mrf.mxu2 }
 0x16e   : > { %v455_v24 = vadd.f32 %v454_v23, %v439_v22  ;;  %v467_v25 = vpop.f32.mrf.mxu3 }
 0x16f   : > { %v468_v26 = vadd.f32 %v467_v25, %v439_v22 }
 0x170   : > { %v471_v27 = vmax.f32 %v455_v24, 0.0 }
 0x171   : > { %v472_v28 = vmax.f32 %v468_v26, 0.0 }
 0x172   : > { %v473_v29 = vpack.c.bf16 %v471_v27, %v471_v27 }
 0x173   : > { %v474_v30 = vpack.c.bf16 %v472_v28, %v472_v28 }
 0x174   : > { %v484_v31 = vsel %vm482_vm2, %v473_v29, 0 }
 0x175   : > { %v456_v32 = vpop.f32.mrf.mxu2  ;;  %496 = vmatpush.bf16.msrb.mxu2 %v484_v31  ;;  %v487_v33 = vsel %vm482_vm2, %v474_v30, 0 }
 0x176   : > { %v469_v35 = vpop.f32.mrf.mxu3  ;;  %509 = vmatpush.bf16.msrb.mxu3 %v487_v33 }
 0x178   : > { %616 = vmatmul.msk.bf16.vlgmr.msrb.gmra.mxu2 %vm478_vm3, %v475_v34 }
 0x179   : > { %617 = vmatmul.msk.bf16.vlgmr.msrb.gmra.mxu3 %vm478_vm3, %v475_v34 }
 0x1fb   : > { %v498_v37 = vpop.f32.mrf.mxu2 }
 0x1fc   : > { %v511_v39 = vpop.f32.mrf.mxu3  ;;  %v499_v41 = vadd.f32 %v498_v37, %v477_v36 }
 0x1fd   : > { %v512_v40 = vadd.f32 %v511_v39, %v477_v36 }
 0x1ff   : > { %v517_v42 = vrot.slane %v512_v40, 7 }
 0x201   : > { %v519_v43 = vsel %vm518_vm4, %v499_v41, %v517_v42 }
 0x202   : > { %525 = vst.msk [vmem:[%s273_s23] sm:$0x3] %vm523_vm5, %v519_v43 }
 0x203   : > { %v500_v44 = vpop.f32.mrf.mxu2 }
 0x204   : > { %692 = shalt.err (!%p689_p3)
}
 0x205   : > { %623 = dma.vmem_to_hbm [thread:$0]  (%p811_p5), %s540_s24, 32, %s542_s25, %s527_s6   ;;  %v513_v45 = vpop.f32.mrf.mxu3 }
 0x206 PF: > { %p629_p4 = scmp.ge.s32.totalorder %s727_s29, 2  ;;  %s553_s17 = sand.u32 1, %s715_s26  }
 0x207   : > { %s554_s19 = scalar_lea.sflag [#allocation4], %s553_s17 }
 0x208   : > { %p626_p7 = pnand %p629_p4, %p815_p6 }
 0x20a   : > { %p627_p8 = pneg %p626_p7 }
 0x20c   : > { %710 = dma.done.wait (%p627_p8), %s554_s19, 32  }
 0x20d   : > { %712 = vsyncadd (%p627_p8), %s554_s19, 4294967264  ;;  %p18_p9 = scmp.ge.s32.totalorder %s798_s8, 4   ;;  %s937_s26 = smov %s719_s27 }
 0x20e   : > { %s938_s27 = smov %s723_s28  ;;  %s939_s28 = smov %s809_s11 }
 0x20f   : > { %s940_s29 = smov %s798_s8  ;;  %20 = sbr.rel (!%p18_p9) target bundleno = 5 (0x5), region = 83 }
 0x214   :  { %560 = vsyncpa [#allocation4], 1 }
 0x215   :  { %562 = vsyncpa [#allocation4 + $0x1], 1 }

</bundles_post_ra>
